<compile_context>
chip_gen: v7x
topology: tpu7x:2x2x1
jax: 0.10.0
libtpu: 0.0.40
codegen_flags: <defaults>
</compile_context>

<pallas_src>
import jax
import jax.numpy as jnp
from jax.experimental import pallas as pl
from jax.experimental.pallas import tpu as pltpu


def _round_up(n: int, m: int) -> int:
    return ((n + m - 1) // m) * m


def _round_down(n: int, m: int) -> int:
    return max(m, (n // m) * m)


def _sublane_align(dtype) -> int:
    # Sublane packing factor: f32 -> 8, bf16/f16 -> 16, int8/fp8 -> 32.
    return {4: 8, 2: 16, 1: 32}.get(jnp.dtype(dtype).itemsize, 8)


def _pick_lane_tile(dim: int, tile: int) -> int:
    """Lane (last) axis tile: multiple of 128, or the full extent."""
    if tile >= dim:
        # Whole axis fits in one block. If it is large enough, split it into
        # two lane-aligned blocks so both v7x TensorCores get parallel work.
        if dim >= 512:
            return _round_up(-(-dim // 2), 128)
        return dim
    return _round_down(tile, 128)


def _pick_sublane_tile(dim: int, tile: int, align: int) -> int:
    """Sublane (second-to-last) axis tile: multiple of `align`, or full extent."""
    if tile >= dim:
        return dim
    return _round_down(tile, align)


def linear_forward(
    x: jax.Array,
    W: jax.Array,
    *,
    tile_b: int = 512,
    tile_i: int = 512,
    tile_o: int = 1024,
    vmem_limit_bytes: int = 32 * 1024 * 1024,
) -> jax.Array:
    """Implements einsum('bi,oi->bi', x, W) as two tiled Pallas TPU kernels."""
    B, I = x.shape
    O, I_w = W.shape
    assert I == I_w, "in_features mismatch"

    TILE_I = _pick_lane_tile(I, tile_i)
    TILE_B = _pick_sublane_tile(B, tile_b, _sublane_align(x.dtype))
    TILE_O = _pick_sublane_tile(O, tile_o, _sublane_align(W.dtype))

    num_i = pl.cdiv(I, TILE_I)
    num_b = pl.cdiv(B, TILE_B)
    num_o = pl.cdiv(O, TILE_O)

    # Only the O tail is dangerous: garbage OOB rows would feed the reduction.
    mask_o_tail = (num_o * TILE_O) > O

    # ---- Pass 1: colsum[i] = sum_o W[o, i]; W streamed from HBM exactly once.
    def colsum_kernel(w_ref, cs_ref):
        @pl.when(pl.program_id(1) == 0)
        def _():
            cs_ref[...] = jnp.zeros_like(cs_ref)

        w = w_ref[...]
        if mask_o_tail:
            # Zero out-of-bounds rows of the (possibly partial) last O block.
            o_start = pl.program_id(1) * TILE_O
            rows = jax.lax.broadcasted_iota(jnp.int32, w.shape, 0)
            w = jnp.where(rows < (O - o_start), w, jnp.zeros_like(w))
        # f32 accumulation; the cast fuses into the per-vreg reduction.
        cs_ref[...] += jnp.sum(w, axis=0, keepdims=True, dtype=jnp.float32)

    colsum = pl.pallas_call(
        colsum_kernel,
        out_shape=jax.ShapeDtypeStruct((1, I), jnp.float32),
        grid_spec=pltpu.PrefetchScalarGridSpec(
            num_scalar_prefetch=0,
            grid=(num_i, num_o),
            in_specs=[pl.BlockSpec((TILE_O, TILE_I), lambda i, o: (o, i))],
            out_specs=pl.BlockSpec((1, TILE_I), lambda i, o: (0, i)),
        ),
        compiler_params=pltpu.CompilerParams(
            dimension_semantics=("parallel", "arbitrary"),
            vmem_limit_bytes=vmem_limit_bytes,
        ),
    )(W)

    # ---- Pass 2: out[b, i] = x[b, i] * colsum[i]  (pure streaming elementwise).
    def scale_kernel(x_ref, cs_ref, o_ref):
        o_ref[...] = (x_ref[...].astype(jnp.float32) * cs_ref[...]).astype(o_ref.dtype)

    out = pl.pallas_call(
        scale_kernel,
        out_shape=jax.ShapeDtypeStruct((B, I), x.dtype),
        grid_spec=pltpu.PrefetchScalarGridSpec(
            num_scalar_prefetch=0,
            # b innermost: colsum block index is constant along the inner axis,
            # so the tiny colsum row stays resident instead of being re-DMA'd.
            grid=(num_i, num_b),
            in_specs=[
                pl.BlockSpec((TILE_B, TILE_I), lambda i, b: (b, i)),
                pl.BlockSpec((1, TILE_I), lambda i, b: (0, i)),
            ],
            out_specs=pl.BlockSpec((TILE_B, TILE_I), lambda i, b: (b, i)),
        ),
        compiler_params=pltpu.CompilerParams(
            dimension_semantics=("parallel", "parallel"),
            vmem_limit_bytes=vmem_limit_bytes,
        ),
    )(x, colsum)
    return out


def init_weight(key, out_features: int, in_features: int, dtype=jnp.float32):
    # Matches torch.nn.init.trunc_normal_(W, a=-3.0, b=3.0): mean=0, std=1,
    # truncated to [-3, 3].
    return jax.random.truncated_normal(
        key, lower=-3.0, upper=3.0, shape=(out_features, in_features)
    ).astype(dtype)


if __name__ == "__main__":
    key = jax.random.PRNGKey(0)
    k_x, k_w, k_x2, k_w2 = jax.random.split(key, 4)

    # Case 1: small single-tile shapes implied by the module.
    batch, in_features, out_features = 8, 128, 32
    x = jax.random.normal(k_x, (batch, in_features), dtype=jnp.float32)
    W = init_weight(k_w, out_features, in_features, dtype=jnp.float32)

    out = linear_forward(x, W)
    jax.block_until_ready(out)
    ref = jnp.einsum("bi,oi->bi", x, W)
    assert out.shape == (batch, in_features)
    assert jnp.allclose(out, ref, atol=1e-4, rtol=1e-4), "case 1 mismatch"

    # Case 2: non-divisible shapes with small explicit tiles to exercise
    # multi-tile grids, the masked O-tail reduction, and partial edge blocks
    # (no host-side padding or output slicing anywhere).
    b2, i2, o2 = 24, 640, 72
    x2 = jax.random.normal(k_x2, (b2, i2), dtype=jnp.float32)
    W2 = init_weight(k_w2, o2, i2, dtype=jnp.float32)

    out2 = linear_forward(x2, W2, tile_b=8, tile_i=256, tile_o=32)
    jax.block_until_ready(out2)
    ref2 = jnp.einsum("bi,oi->bi", x2, W2)
    assert out2.shape == (b2, i2)
    assert jnp.allclose(out2, ref2, atol=1e-4, rtol=1e-4), "case 2 mismatch"

    print("KERNEL_OK")
</pallas_src>

<mosaic_0001>
module attributes {stable_mosaic.version = 11 : i64} {
  func.func @colsum_kernel(%arg0: i32, %arg1: i32, %arg2: memref<32x128xf32, #tpu.memory_space<vmem>>, %arg3: memref<1x128xf32, #tpu.memory_space<vmem>>) attributes {dimension_semantics = [#tpu.dimension_semantics<parallel>, #tpu.dimension_semantics<arbitrary>], iteration_bounds = array<i64: 1, 1>, scalar_prefetch = 0 : i64, scratch_operands = 0 : i64, tpu.core_type = #tpu.core_type<tc>, window_params = [{transform_indices = @transform_0, window_bounds = array<i64: 32, 128>}, {transform_indices = @transform_1, window_bounds = array<i64: 1, 128>}]} {
    %c0_i32 = arith.constant 0 : i32
    %0 = arith.cmpi eq, %arg1, %c0_i32 : i32
    %1 = arith.extui %0 : i1 to i32
    %c0_i32_0 = arith.constant 0 : i32
    %2 = arith.cmpi ne, %1, %c0_i32_0 : i32
    scf.if %2 {
      %cst_6 = arith.constant 0.000000e+00 : f32
      %9 = vector.broadcast %cst_6 : f32 to vector<1x128xf32>
      %c0_7 = arith.constant 0 : index
      %c0_8 = arith.constant 0 : index
      %10 = vector.load %arg3[%c0_7, %c0_8] : memref<1x128xf32, #tpu.memory_space<vmem>>, vector<1x128xf32>
      tpu.vector_store %arg3[%c0_7, %c0_8], %9 {strides = array<i32>} : memref<1x128xf32, #tpu.memory_space<vmem>>, vector<1x128xf32>,
    } else {
    }
    %c0 = arith.constant 0 : index
    %c0_1 = arith.constant 0 : index
    %3 = vector.load %arg2[%c0, %c0_1] : memref<32x128xf32, #tpu.memory_space<vmem>>, vector<32x128xf32>
    %c0_2 = arith.constant 0 : index
    %c0_3 = arith.constant 0 : index
    %4 = vector.load %arg3[%c0_2, %c0_3] : memref<1x128xf32, #tpu.memory_space<vmem>>, vector<1x128xf32>
    %cst = arith.constant dense<0.000000e+00> : vector<128xf32>
    %5 = vector.multi_reduction <add>, %3, %cst [0] : vector<32x128xf32> to vector<128xf32>
    %6 = vector.shape_cast %5 : vector<128xf32> to vector<1x128xf32>
    %7 = arith.addf %4, %6 : vector<1x128xf32>
    %c0_4 = arith.constant 0 : index
    %c0_5 = arith.constant 0 : index
    %8 = vector.load %arg3[%c0_4, %c0_5] : memref<1x128xf32, #tpu.memory_space<vmem>>, vector<1x128xf32>
    tpu.vector_store %arg3[%c0_4, %c0_5], %7 {strides = array<i32>} : memref<1x128xf32, #tpu.memory_space<vmem>>, vector<1x128xf32>,
    return
  }
  func.func @transform_0(%arg0: i32, %arg1: i32) -> (i32, i32) {
    %c0_i32 = arith.constant 0 : i32
    return %arg1, %arg0 : i32, i32
  }
  func.func @transform_1(%arg0: i32, %arg1: i32) -> (i32, i32) {
    %c0_i32 = arith.constant 0 : i32
    %c0_i32_0 = arith.constant 0 : i32
    return %c0_i32, %arg0 : i32, i32
  }
}

</mosaic_0001>

<bundles_post_ra>
// kernel: tpu_custom_call.1
= control target key start
LH: loop header
LB: loop body
LE: loop exit
PB: predicated region body
PF: predicated region fallthrough
CT: control target
= control target key end

     0   :  { %6 = vsyncpa [#allocation3], 0  ;;  %s151_s0 = inlined_call_operand.hbm [shape: f32[32,128], index: 0, kind: input, shape index: {}]   ;;  %s152_s1 = inlined_call_operand.hbm [shape: f32[1,128], index: 1, kind: output, shape index: {}]  }
   0x1   :  { %7 = vsyncpa [#allocation4], 0  ;;  %s112_s6 = smov [#allocation2]   ;;  %s64_s10 = scalar_lea.hbm %s151_s0, 512 }
   0x2   :  { %s13_s7 = sshll.u32 %s112_s6, 4  ;;  %p65_p0 = scmp.ne.s32.totalorder %s151_s0, %s64_s10  ;;  %s14_s7 = int_to_ptr.vmem [resolvable:$true] %s13_s7 }
   0x3   :  { %p68_p1 = scmp.lt.u32.totalorder %s64_s10, %s151_s0 }
   0x5   :  { %p70_p2 = pnand %p68_p1, %p65_p0 }
   0x7   :  { %73 = shalt.err (!%p70_p2)
}
   0x8   :  { %s74_s15 = scalar_lea.vmem %s14_s7, 512  ;;  %p79_p4 = scmp.lt.s32.totalorder %s14_s7, %s14_s7 }
   0x9   :  { %p75_p3 = scmp.ne.s32.totalorder %s14_s7, %s74_s15  ;;  %p80_p5 = scmp.lt.s32.totalorder %s74_s15, %s74_s15 }
   0xb   :  { %p81_p6 = por %p80_p5, %p79_p4 }
   0xd   :  { %p82_p7 = pnand %p81_p6, %p75_p3 }
   0xf   :  { %85 = shalt.err (!%p82_p7)
}
  0x10   :  { %s113_s16 = smov 128   ;;  %s114_s17 = smov 8  }
  0x11   :  { %19 = dma.hbm_to_vmem [thread:$0]  %s151_s0, 512, %s14_s7, [#allocation3], %s113_s16, %s113_s16, %s114_s17  }
  0x12   :  { %108 = dma.done.wait [#allocation3], 512  }
  0x13   :  { %109 = vsyncadd [#allocation3], 4294966784  ;;  %v115_v0 = vmov 0.0   ;;  %v28_v1 = vld [vmem:[#allocation2] sm:$0xff]  ;;  %v29_v2 = vld [vmem:[#allocation2 + $0x8] sm:$0xff]  ;;  %s116_s20 = smov [#allocation5]  }
  0x14   :  { %27 = vst [vmem:[#allocation5] sm:$0x1] %v115_v0  ;;  %v30_v3 = vld [vmem:[#allocation2 + $0x10] sm:$0xff]  ;;  %v33_v4 = vadd.f32 %v29_v2, %v28_v1  ;;  %v31_v5 = vld [vmem:[#allocation2 + $0x18] sm:$0xff]  ;;  %s50_s21 = sshll.u32 %s116_s20, 4  ;;  %s51_s21 = int_to_ptr.vmem [resolvable:$true] %s50_s21 }
  0x15   :  { %s86_s0 = scalar_lea.vmem %s51_s21, 16  ;;  %s90_s22 = scalar_lea.vmem %s51_s21, 32 }
  0x16   :  { %v34_v6 = vadd.f32 %v33_v4, %v30_v3  ;;  %p87_p8 = scmp.ne.s32.totalorder %s51_s21, %s86_s0  ;;  %p91_p9 = scmp.lt.s32.totalorder %s51_s21, %s51_s21 }
  0x17   :  { %p92_p10 = scmp.lt.s32.totalorder %s90_s22, %s86_s0 }
  0x18   :  { %v35_v7 = vadd.f32 %v34_v6, %v31_v5 }
  0x19   :  { %p93_p11 = por %p92_p10, %p91_p9 }
  0x1a   :  { %v36_v8 = vrot.slane %v35_v7, 4 }
  0x1b   :  { %v32_v13 = vld [vmem:[#allocation5] sm:$0x1]  ;;  %p94_p12 = pnand %p93_p11, %p87_p8 }
  0x1c   :  { %v37_v9 = vadd.f32 %v36_v8, %v35_v7 }
  0x1e   :  { %v38_v10 = vrot.slane %v37_v9, 2 }
  0x20   :  { %v39_v11 = vadd.f32 %v38_v10, %v37_v9 }
  0x22   :  { %v40_v12 = vrot.slane %v39_v11, 1 }
  0x24   :  { %v41_v14 = vadd.f32 %v40_v12, %v39_v11 }
  0x26   :  { %v42_v15 = vadd.f32 %v41_v14, %v32_v13 }
  0x28   :  { %43 = vst [vmem:[#allocation5] sm:$0x1] %v42_v15 }
  0x29   :  { %97 = shalt.err (!%p94_p12)
}
  0x2a   :  { %s98_s25 = scalar_lea.hbm %s152_s1, 16 }
  0x2b   :  { %p99_p13 = scmp.ne.s32.totalorder %s152_s1, %s98_s25  ;;  %p102_p0 = scmp.lt.u32.totalorder %s98_s25, %s152_s1 }
  0x2d   :  { %p104_p1 = pnand %p102_p0, %p99_p13 }
  0x2f   :  { %107 = shalt.err (!%p104_p1)
}
  0x30   :  { %53 = dma.vmem_to_hbm [thread:$0]  %s51_s21, 16, %s152_s1, [#allocation4]  }
  0x31   :  { %110 = dma.done.wait [#allocation4], 16  }
  0x32   :  { %111 = vsyncadd [#allocation4], 4294967280 }
  0x33   :  { %57 = vsyncpa [#allocation3], 1 }
  0x34   :  { %58 = vsyncpa [#allocation4], 1 }

</bundles_post_ra>
